<compile_context>
chip_gen: v5e
topology: v5e:2x2
jax: 0.10.0
libtpu: 0.0.40
codegen_flags: <defaults>
</compile_context>

<pallas_src>
import jax
import jax.numpy as jnp
import numpy as np
from jax import lax
from jax.experimental import pallas as pl
from jax.experimental.pallas import tpu as pltpu

PAD_IDX = 0


def simple_attention_kernel(x_ref, emb_ref, wq_ref, w1_ref, b1_ref,
                            w2_ref, b2_ref, logits_ref, alpha_ref):
    TB, S = x_ref.shape
    V, E = emb_ref.shape

    tok = x_ref[...]                    # (TB, S) int32 token ids
    emb = emb_ref[...]                  # (V, E)  f32 embedding table

    # ---- Fused embedding gather: one-hot @ table on the MXU (V is tiny). ----
    v_ids = lax.broadcasted_iota(jnp.int32, (TB, S, V), 2)
    onehot = (tok[:, :, None] == v_ids).astype(jnp.float32)        # (TB, S, V)
    # S is a multiple of the sublane count (8), so merging (TB, S) is
    # layout-preserving; the split back afterwards likewise.
    e2d = jnp.dot(onehot.reshape(TB * S, V), emb,
                  preferred_element_type=jnp.float32)              # (TB*S, E)
    x_emb = e2d.reshape(TB, S, E)                                  # (TB, S, E)

    # ---- Attention scores: q(x_emb); wq is (1, E) = Linear(E, 1, bias=False).
    scores = jnp.sum(x_emb * wq_ref[...][None, :, :], axis=-1)     # (TB, S)
    scores = jnp.where(tok == PAD_IDX, -jnp.inf, scores)

    # ---- Masked softmax over the sequence axis (dim=1). ---------------------
    m = jnp.max(scores, axis=1, keepdims=True)                     # (TB, 1)
    p = jnp.exp(scores - m)                                        # (TB, S)
    denom = jnp.sum(p, axis=1, keepdims=True)                      # (TB, 1)
    inv_denom = pl.reciprocal(denom, approx=True)                  # EUP slot
    alpha = p * inv_denom                                          # (TB, S)

    # ---- z = (alpha_expanded * x_emb).sum(dim=1), then MLP. ------------------
    z = jnp.sum(alpha[:, :, None] * x_emb, axis=1)                 # (TB, E)
    h = jnp.dot(z, w1_ref[...], preferred_element_type=jnp.float32) + b1_ref[...]
    h = jnp.maximum(h, 0.0)
    logits = (jnp.dot(h, w2_ref[...], preferred_element_type=jnp.float32)
              + b2_ref[...])

    logits_ref[...] = logits                                       # (TB, O)
    alpha_ref[...] = alpha                                         # (TB, S) lane-dense


def _batch_tile(batch):
    # Single tile for small batches (full-dim block satisfies the (8,128) rule);
    # otherwise 128 rows per tile: a multiple of 8 whose per-tile intermediates
    # stay far under VMEM on every generation (incl. v7x's 64 MiB), leaving
    # room for double-buffered pipelining of x / outputs.
    return batch if batch <= 128 else 128


def simple_attention(x, embeddings, wq, w1, b1, w2, b2):
    """x: (B, S) int32 token ids. Returns (logits (B, O), alpha (B, S, 1))."""
    B, S = x.shape
    V, E = embeddings.shape
    H = w1.shape[1]
    O = w2.shape[1]
    x = x.astype(jnp.int32)

    TB = _batch_tile(B)
    grid = (pl.cdiv(B, TB),)

    def tiled(shape):        # block walks along the batch axis
        return pl.BlockSpec(shape, lambda i, _n=len(shape): (i,) + (0,) * (_n - 1))

    def invariant(shape):    # same block every grid step (weights / table)
        return pl.BlockSpec(shape, lambda i, _n=len(shape): (0,) * _n)

    logits, alpha = pl.pallas_call(
        simple_attention_kernel,
        grid=grid,
        in_specs=[
            tiled((TB, S)),        # x
            invariant((V, E)),     # embedding table (gather fused in-kernel)
            invariant((1, E)),     # wq
            invariant((E, H)),     # w1
            invariant((1, H)),     # b1
            invariant((H, O)),     # w2
            invariant((1, O)),     # b2
        ],
        out_specs=(tiled((TB, O)), tiled((TB, S))),
        out_shape=(
            jax.ShapeDtypeStruct((B, O), jnp.float32),
            jax.ShapeDtypeStruct((B, S), jnp.float32),   # lane-dense alpha
        ),
        compiler_params=pltpu.CompilerParams(
            dimension_semantics=("parallel",)),          # megacore split on v7x
    )(x, embeddings, wq, w1, b1, w2, b2)

    # Match the PyTorch module's (B, S, 1) alpha shape outside the kernel.
    return logits, alpha[:, :, None]


def reference(x, embeddings, wq, w1, b1, w2, b2):
    """Pure-JAX reference mirroring the PyTorch forward exactly."""
    x_emb = jnp.take(embeddings, x, axis=0)
    scores = jnp.einsum("bse,e->bs", x_emb, wq[0])
    scores = jnp.where(x == PAD_IDX, -jnp.inf, scores)
    alpha = jax.nn.softmax(scores, axis=1)
    z = jnp.sum(alpha[:, :, None] * x_emb, axis=1)
    h = jax.nn.relu(z @ w1 + b1)
    logits = h @ w2 + b2
    return logits, alpha[:, :, None]


if __name__ == "__main__":
    # Small deterministic shapes consistent with the module's forward.
    B, S = 2, 8          # batch, sequence length
    V, E = 20, 32        # vocab size, embedding_dim
    H = E // 2           # MLP hidden
    O = 4                # output_dim

    key = jax.random.PRNGKey(0)
    k_emb, k_wq, k_w1, k_b1, k_w2, k_b2, k_x = jax.random.split(key, 7)

    embeddings = jax.random.normal(k_emb, (V, E), dtype=jnp.float32)
    wq = jax.random.normal(k_wq, (1, E), dtype=jnp.float32) * 0.1   # q: Linear(E,1,bias=False)
    w1 = jax.random.normal(k_w1, (E, H), dtype=jnp.float32) * 0.1
    b1 = jax.random.normal(k_b1, (1, H), dtype=jnp.float32) * 0.1
    w2 = jax.random.normal(k_w2, (H, O), dtype=jnp.float32) * 0.1
    b2 = jax.random.normal(k_b2, (1, O), dtype=jnp.float32) * 0.1

    # Token ids in [1, V); inject some pad tokens to exercise the mask path.
    # (All-pad rows would produce NaNs, same as the PyTorch module.)
    x = jax.random.randint(k_x, (B, S), 1, V, dtype=jnp.int32)
    x = x.at[0, -2:].set(PAD_IDX)
    x = x.at[1, -1:].set(PAD_IDX)

    logits, alpha = simple_attention(x, embeddings, wq, w1, b1, w2, b2)
    jax.block_until_ready((logits, alpha))

    ref_logits, ref_alpha = reference(x, embeddings, wq, w1, b1, w2, b2)
    # Tolerance accounts for the EUP approximate reciprocal in the softmax.
    np.testing.assert_allclose(np.asarray(logits), np.asarray(ref_logits),
                               rtol=2e-3, atol=2e-3)
    np.testing.assert_allclose(np.asarray(alpha), np.asarray(ref_alpha),
                               rtol=2e-3, atol=2e-3)

    print("KERNEL_OK")
</pallas_src>

<mosaic_0001>
module attributes {stable_mosaic.version = 11 : i64} {
  func.func @simple_attention_kernel(%arg0: i32, %arg1: memref<2x8xi32, #tpu.memory_space<vmem>>, %arg2: memref<20x32xf32, #tpu.memory_space<vmem>>, %arg3: memref<1x32xf32, #tpu.memory_space<vmem>>, %arg4: memref<32x16xf32, #tpu.memory_space<vmem>>, %arg5: memref<1x16xf32, #tpu.memory_space<vmem>>, %arg6: memref<16x4xf32, #tpu.memory_space<vmem>>, %arg7: memref<1x4xf32, #tpu.memory_space<vmem>>, %arg8: memref<2x4xf32, #tpu.memory_space<vmem>>, %arg9: memref<2x8xf32, #tpu.memory_space<vmem>>) attributes {dimension_semantics = [#tpu.dimension_semantics<parallel>], iteration_bounds = array<i64: 1>, scalar_prefetch = 0 : i64, scratch_operands = 0 : i64, tpu.core_type = #tpu.core_type<tc>, window_params = [{transform_indices = @transform_0, window_bounds = array<i64: 2, 8>}, {pipeline_mode = #tpu.pipeline_mode<synchronous>, transform_indices = @transform_1, window_bounds = array<i64: 20, 32>}, {pipeline_mode = #tpu.pipeline_mode<synchronous>, transform_indices = @transform_2, window_bounds = array<i64: 1, 32>}, {pipeline_mode = #tpu.pipeline_mode<synchronous>, transform_indices = @transform_3, window_bounds = array<i64: 32, 16>}, {pipeline_mode = #tpu.pipeline_mode<synchronous>, transform_indices = @transform_4, window_bounds = array<i64: 1, 16>}, {pipeline_mode = #tpu.pipeline_mode<synchronous>, transform_indices = @transform_5, window_bounds = array<i64: 16, 4>}, {pipeline_mode = #tpu.pipeline_mode<synchronous>, transform_indices = @transform_6, window_bounds = array<i64: 1, 4>}, {transform_indices = @transform_7, window_bounds = array<i64: 2, 4>}, {transform_indices = @transform_8, window_bounds = array<i64: 2, 8>}]} {
    %c0 = arith.constant 0 : index
    %c0_0 = arith.constant 0 : index
    %0 = vector.load %arg1[%c0, %c0_0] : memref<2x8xi32, #tpu.memory_space<vmem>>, vector<2x8xi32>
    %c0_1 = arith.constant 0 : index
    %c0_2 = arith.constant 0 : index
    %1 = vector.load %arg2[%c0_1, %c0_2] : memref<20x32xf32, #tpu.memory_space<vmem>>, vector<20x32xf32>
    %2 = tpu.iota {dimensions = array<i32: 2>} : vector<2x8x20xi32>
    %3 = vector.shape_cast %0 : vector<2x8xi32> to vector<2x8x1xi32>
    %4 = vector.broadcast %3 : vector<2x8x1xi32> to vector<2x8x20xi32>
    %5 = arith.cmpi eq, %4, %2 : vector<2x8x20xi32>
    %6 = arith.extui %5 : vector<2x8x20xi1> to vector<2x8x20xi32>
    %7 = arith.sitofp %6 : vector<2x8x20xi32> to vector<2x8x20xf32>
    %8 = vector.shape_cast %7 : vector<2x8x20xf32> to vector<16x20xf32>
    %cst = arith.constant dense<0.000000e+00> : vector<16x32xf32>
    %9 = tpu.matmul %8, %1, %cst {dimension_numbers = #tpu.dot_dimension_numbers<[1], [0], [0], [1], [0, 0, 1, 1], [], []>} : vector<16x20xf32>, vector<20x32xf32>, vector<16x32xf32> -> vector<16x32xf32>
    %10 = vector.shape_cast %9 : vector<16x32xf32> to vector<2x8x32xf32>
    %c0_3 = arith.constant 0 : index
    %c0_4 = arith.constant 0 : index
    %11 = vector.load %arg3[%c0_3, %c0_4] : memref<1x32xf32, #tpu.memory_space<vmem>>, vector<1x32xf32>
    %12 = vector.shape_cast %11 : vector<1x32xf32> to vector<1x1x32xf32>
    %13 = vector.broadcast %12 : vector<1x1x32xf32> to vector<2x8x32xf32>
    %14 = arith.mulf %10, %13 : vector<2x8x32xf32>
    %cst_5 = arith.constant dense<0.000000e+00> : vector<2x8xf32>
    %15 = vector.multi_reduction <add>, %14, %cst_5 [2] : vector<2x8x32xf32> to vector<2x8xf32>
    %c0_i32 = arith.constant 0 : i32
    %16 = vector.broadcast %c0_i32 : i32 to vector<2x8xi32>
    %17 = arith.cmpi eq, %0, %16 : vector<2x8xi32>
    %cst_6 = arith.constant 0xFF800000 : f32
    %18 = vector.broadcast %cst_6 : f32 to vector<2x8xf32>
    %19 = arith.select %17, %18, %15 : vector<2x8xi1>, vector<2x8xf32>
    %cst_7 = arith.constant dense<0xFF800000> : vector<2xf32>
    %20 = vector.multi_reduction <maximumf>, %19, %cst_7 [1] : vector<2x8xf32> to vector<2xf32>
    %21 = vector.shape_cast %20 : vector<2xf32> to vector<2x1xf32>
    %22 = vector.broadcast %21 : vector<2x1xf32> to vector<2x8xf32>
    %23 = arith.subf %19, %22 : vector<2x8xf32>
    %24 = math.exp %23 : vector<2x8xf32>
    %cst_8 = arith.constant dense<0.000000e+00> : vector<2xf32>
    %25 = vector.multi_reduction <add>, %24, %cst_8 [1] : vector<2x8xf32> to vector<2xf32>
    %26 = vector.shape_cast %25 : vector<2xf32> to vector<2x1xf32>
    %27 = tpu.reciprocal %26 {approx = true} : vector<2x1xf32> -> vector<2x1xf32>
    %28 = vector.broadcast %27 : vector<2x1xf32> to vector<2x8xf32>
    %29 = arith.mulf %24, %28 : vector<2x8xf32>
    %30 = vector.shape_cast %29 : vector<2x8xf32> to vector<2x8x1xf32>
    %31 = vector.broadcast %30 : vector<2x8x1xf32> to vector<2x8x32xf32>
    %32 = arith.mulf %31, %10 : vector<2x8x32xf32>
    %cst_9 = arith.constant dense<0.000000e+00> : vector<2x32xf32>
    %33 = vector.multi_reduction <add>, %32, %cst_9 [1] : vector<2x8x32xf32> to vector<2x32xf32>
    %c0_10 = arith.constant 0 : index
    %c0_11 = arith.constant 0 : index
    %34 = vector.load %arg4[%c0_10, %c0_11] : memref<32x16xf32, #tpu.memory_space<vmem>>, vector<32x16xf32>
    %cst_12 = arith.constant dense<0.000000e+00> : vector<2x16xf32>
    %35 = tpu.matmul %33, %34, %cst_12 {dimension_numbers = #tpu.dot_dimension_numbers<[1], [0], [0], [1], [0, 0, 1, 1], [], []>} : vector<2x32xf32>, vector<32x16xf32>, vector<2x16xf32> -> vector<2x16xf32>
    %c0_13 = arith.constant 0 : index
    %c0_14 = arith.constant 0 : index
    %36 = vector.load %arg5[%c0_13, %c0_14] : memref<1x16xf32, #tpu.memory_space<vmem>>, vector<1x16xf32>
    %37 = vector.broadcast %36 : vector<1x16xf32> to vector<2x16xf32>
    %38 = arith.addf %35, %37 : vector<2x16xf32>
    %cst_15 = arith.constant 0.000000e+00 : f32
    %39 = vector.broadcast %cst_15 : f32 to vector<2x16xf32>
    %40 = arith.maximumf %38, %39 : vector<2x16xf32>
    %c0_16 = arith.constant 0 : index
    %c0_17 = arith.constant 0 : index
    %41 = vector.load %arg6[%c0_16, %c0_17] : memref<16x4xf32, #tpu.memory_space<vmem>>, vector<16x4xf32>
    %cst_18 = arith.constant dense<0.000000e+00> : vector<2x4xf32>
    %42 = tpu.matmul %40, %41, %cst_18 {dimension_numbers = #tpu.dot_dimension_numbers<[1], [0], [0], [1], [0, 0, 1, 1], [], []>} : vector<2x16xf32>, vector<16x4xf32>, vector<2x4xf32> -> vector<2x4xf32>
    %c0_19 = arith.constant 0 : index
    %c0_20 = arith.constant 0 : index
    %43 = vector.load %arg7[%c0_19, %c0_20] : memref<1x4xf32, #tpu.memory_space<vmem>>, vector<1x4xf32>
    %44 = vector.broadcast %43 : vector<1x4xf32> to vector<2x4xf32>
    %45 = arith.addf %42, %44 : vector<2x4xf32>
    %c0_21 = arith.constant 0 : index
    %c0_22 = arith.constant 0 : index
    %46 = vector.load %arg8[%c0_21, %c0_22] : memref<2x4xf32, #tpu.memory_space<vmem>>, vector<2x4xf32>
    tpu.vector_store %arg8[%c0_21, %c0_22], %45 {strides = array<i32>} : memref<2x4xf32, #tpu.memory_space<vmem>>, vector<2x4xf32>,
    %c0_23 = arith.constant 0 : index
    %c0_24 = arith.constant 0 : index
    %47 = vector.load %arg9[%c0_23, %c0_24] : memref<2x8xf32, #tpu.memory_space<vmem>>, vector<2x8xf32>
    tpu.vector_store %arg9[%c0_23, %c0_24], %29 {strides = array<i32>} : memref<2x8xf32, #tpu.memory_space<vmem>>, vector<2x8xf32>,
    return
  }
  func.func @transform_0(%arg0: i32) -> (i32, i32) {
    %c0_i32 = arith.constant 0 : i32
    %c0_i32_0 = arith.constant 0 : i32
    return %arg0, %c0_i32 : i32, i32
  }
  func.func @transform_1(%arg0: i32) -> (i32, i32) {
    %c0_i32 = arith.constant 0 : i32
    %c0_i32_0 = arith.constant 0 : i32
    %c0_i32_1 = arith.constant 0 : i32
    return %c0_i32, %c0_i32_0 : i32, i32
  }
  func.func @transform_2(%arg0: i32) -> (i32, i32) {
    %c0_i32 = arith.constant 0 : i32
    %c0_i32_0 = arith.constant 0 : i32
    %c0_i32_1 = arith.constant 0 : i32
    return %c0_i32, %c0_i32_0 : i32, i32
  }
  func.func @transform_3(%arg0: i32) -> (i32, i32) {
    %c0_i32 = arith.constant 0 : i32
    %c0_i32_0 = arith.constant 0 : i32
    %c0_i32_1 = arith.constant 0 : i32
    return %c0_i32, %c0_i32_0 : i32, i32
  }
  func.func @transform_4(%arg0: i32) -> (i32, i32) {
    %c0_i32 = arith.constant 0 : i32
    %c0_i32_0 = arith.constant 0 : i32
    %c0_i32_1 = arith.constant 0 : i32
    return %c0_i32, %c0_i32_0 : i32, i32
  }
  func.func @transform_5(%arg0: i32) -> (i32, i32) {
    %c0_i32 = arith.constant 0 : i32
    %c0_i32_0 = arith.constant 0 : i32
    %c0_i32_1 = arith.constant 0 : i32
    return %c0_i32, %c0_i32_0 : i32, i32
  }
  func.func @transform_6(%arg0: i32) -> (i32, i32) {
    %c0_i32 = arith.constant 0 : i32
    %c0_i32_0 = arith.constant 0 : i32
    %c0_i32_1 = arith.constant 0 : i32
    return %c0_i32, %c0_i32_0 : i32, i32
  }
  func.func @transform_7(%arg0: i32) -> (i32, i32) {
    %c0_i32 = arith.constant 0 : i32
    %c0_i32_0 = arith.constant 0 : i32
    return %arg0, %c0_i32 : i32, i32
  }
  func.func @transform_8(%arg0: i32) -> (i32, i32) {
    %c0_i32 = arith.constant 0 : i32
    %c0_i32_0 = arith.constant 0 : i32
    return %arg0, %c0_i32 : i32, i32
  }
}

</mosaic_0001>

<bundles_post_ra>
// kernel: tpu_custom_call.1
= control target key start
LH: loop header
LB: loop body
LE: loop exit
PB: predicated region body
PF: predicated region fallthrough
CT: control target
= control target key end

     0   :  { %14 = vsyncpa [#allocation3], 0  ;;  %v34_v0 = vlaneseq  ;;  %vm63_vm0 = vcmask 1043456   ;;  %s430_s0 = inlined_call_operand.vmem [shape: s32[2,8], index: 0, kind: input, shape index: {}]   ;;  %s431_s1 = inlined_call_operand.vmem [shape: f32[20,32], index: 1, kind: input, shape index: {}]   ;;  %s432_s2 = inlined_call_operand.vmem [shape: f32[1,32], index: 2, kind: input, shape index: {}]   ;;  %s433_s3 = inlined_call_operand.vmem [shape: f32[32,16], index: 3, kind: input, shape index: {}]   ;;  %s434_s4 = inlined_call_operand.vmem [shape: f32[1,16], index: 4, kind: input, shape index: {}]   ;;  %s435_s5 = inlined_call_operand.vmem [shape: f32[16,4], index: 5, kind: input, shape index: {}]   ;;  %s436_s6 = inlined_call_operand.vmem [shape: f32[1,4], index: 6, kind: input, shape index: {}]   ;;  %s437_s7 = inlined_call_operand.hbm [shape: f32[2,4], index: 7, kind: output, shape index: {0}]   ;;  %s438_s8 = inlined_call_operand.hbm [shape: f32[2,8], index: 8, kind: output, shape index: {1}]  }
   0x1   :  { %v33_v1 = vld [vmem:[%s431_s1 + $0x10] sm:$0xf]  ;;  %v32_v2 = vld [vmem:[%s431_s1 + $0x8] sm:$0xff] }
   0x2   :  { %260 = vmatpush.msk.msra.mxu3 %vm63_vm0, %v33_v1  ;;  %255 = vmatpush.msk.msra.mxu0 %vm63_vm0, %v33_v1  ;;  %v38_v3 = vshrl.u32 %v34_v0, 7 }
   0x4   :  { %261 = vmatpush.msra.mxu3 %v32_v2  ;;  %81 = vmatpush.msra.mxu0 %v32_v2 }
   0x5   :  { %15 = vsyncpa [#allocation5], 0  ;;  %266 = vset.pattern.permute.xlu0 %v38_v3  ;;  %267 = vset.pattern.permute.xlu1 %v38_v3  ;;  %v30_v4 = vld [vmem:[%s430_s0] sm:$0x3]  ;;  %v35_v8 = vand.u32 127, %v34_v0  ;;  %vm56_vm1 = vcmask 162816  }
   0x6   :  { %v43_v5 = vperm.slane %v30_v4, 1  ;;  %v36_v6 = vperm.slane %v30_v4, 0  ;;  %v31_v7 = vld [vmem:[%s431_s1] sm:$0xff]  ;;  %v327_v10 = vmov 0.0   ;;  %vm96_vm4 = vcmask 261120   ;;  %v157_v38 = vld [vmem:[%s433_s3 + $0x18] sm:$0xff] }
   0x7   :  { %262 = vmatpush.msra.mxu3 %v31_v7  ;;  %82 = vmatpush.msra.mxu0 %v31_v7  ;;  %v268_v14 = vld [vmem:[%s432_s2] ss:$0 sm:$0xff]  ;;  %vm108_vm5 = vcmask 1041409   ;;  %vm103_vm6 = vcmp.eq.s32.totalorder %v30_v4, 0  ;;  %vm112_vm7 = vcmask 58368   ;;  %v156_v39 = vld [vmem:[%s433_s3 + $0x10] sm:$0xff] }
   0x8   :  { %179 = vmatpush.msra.mxu1 %v157_v38  ;;  %v155_v40 = vld [vmem:[%s433_s3 + $0x8] sm:$0xff]  ;;  %v154_v41 = vld [vmem:[%s433_s3] sm:$0xff]  ;;  %vm194_vm8 = vcmask 130048   ;;  %s328_s25 = smov [#allocation4]   ;;  %s239_s29 = sshll.u32 %s438_s8, 4  ;;  %vm218_vm9 = vcmask 25600   ;;  %s240_s29 = int_to_ptr.hbm [resolvable:$true] %s239_s29 }
   0x9   :  { %v189_v61 = vld [vmem:[%s435_s5 + $0x8] sm:$0xff]  ;;  %v188_v62 = vld [vmem:[%s435_s5] sm:$0xff]  ;;  %s237_s26 = sshll.u32 %s328_s25, 4  ;;  %s329_s9 = smov [#allocation2]   ;;  %s238_s26 = int_to_ptr.vmem [resolvable:$true] %s237_s26 }
   0xa   :  { %180 = vmatpush.msra.mxu1 %v156_v39  ;;  %212 = vmatpush.msra.mxu2 %v189_v61  ;;  %v269_v63 = vld [vmem:[%s434_s4] ss:$0 sm:$0xff]  ;;  %s226_s4 = sshll.u32 %s329_s9, 4  ;;  %s228_s12 = sshll.u32 %s437_s7, 4  ;;  %s227_s4 = int_to_ptr.vmem [resolvable:$true] %s226_s4  ;;  %s229_s12 = int_to_ptr.hbm [resolvable:$true] %s228_s12 }
   0xb   :  { %v270_v3 = vld [vmem:[%s436_s6] ss:$0 sm:$0xff] }
   0xc   :  { %181 = vmatpush.msra.mxu1 %v155_v40  ;;  %213 = vmatpush.msra.mxu2 %v188_v62 }
   0xd   :  { %48 = vperm.xlu0 %266, %v43_v5  }
   0xe   :  { %182 = vmatpush.msra.mxu1 %v154_v41 }
  0x15   :  { %41 = vperm.xlu0 %266, %v36_v6  }
  0x7f   :  { %v49_v9 = vpop.permute.xlu0 %48 }
  0x80   :  { %vm51_vm2 = vcmp.eq.s32.totalorder %v49_v9, %v35_v8 }
  0x81   :  { %v254_v11 = vsel %vm51_vm2, 1.0, %v327_v10 }
  0x82   :  { %257 = vmatmul.msk.f32.vlgmr.msra.gmra.mxu3 %vm56_vm1, %v254_v11 }
  0x87   :  { %v42_v12 = vpop.permute.xlu0 %41 }
  0x88   :  { %vm50_vm3 = vcmp.eq.s32.totalorder %v42_v12, %v35_v8 }
  0x89   :  { %v253_v13 = vsel %vm50_vm3, 1.0, %v327_v10 }
  0x8a   :  { %256 = vmatmul.msk.f32.vlgmr.msra.gmra.mxu0 %vm56_vm1, %v253_v13 }
 0x105   :  { %v87_v18 = vpop.f32.mrf.mxu3 }
 0x106   :  { %v95_v19 = vmul.f32 %v268_v14, %v87_v18 }
 0x107   :  { %v84_v15 = vpop.f32.mrf.mxu0 }
 0x108   :  { %v94_v16 = vmul.f32 %v268_v14, %v84_v15  ;;  %v100_v20 = vsel %vm96_vm4, %v95_v19, 0.0 }
 0x10a   :  { %v97_v17 = vsel %vm96_vm4, %v94_v16, 0.0 }
 0x10b   :  { %98 = vadd.xlane.f32.xlu1 %v97_v17 }
 0x113   :  { %101 = vadd.xlane.f32.xlu1 %v100_v20 }
 0x17e   :  { %v99_v21 = vpop.xlane.xlu1 %98 }
 0x17f   :  { %v106_v23 = vperm.slane %v99_v21, %v35_v8 }
 0x186   :  { %v102_v22 = vpop.xlane.xlu1 %101 }
 0x187   :  { %v107_v24 = vperm.slane %v102_v22, %v35_v8 }
 0x189   :  { %v109_v25 = vsel %vm108_vm5, %v107_v24, %v106_v23 }
 0x18a   :  { %v111_v26 = vsel %vm103_vm6, -inf, %v109_v25 }
 0x18b   :  { %v113_v27 = vsel %vm112_vm7, %v111_v26, -inf }
 0x18c   :  { %114 = vmax.xlane.f32.xlu2 %v113_v27 }
 0x1ff   :  { %v115_v28 = vpop.xlane.xlu2 %114 }
 0x200   :  { %v116_v29 = vsub.f32 %v111_v26, %v115_v28 }
 0x202   :  { %v117_v30 = vmul.f32 1.442695, %v116_v29 }
 0x204   :  { %271 = vpow2.f32 %v117_v30 }
 0x20a   :  { %v272_v31 = vpop.eup %271 }
 0x20b   :  { %v119_v32 = vsel %vm112_vm7, %v272_v31, 0.0 }
 0x20c   :  { %120 = vadd.xlane.f32.xlu2 %v119_v32 }
 0x27f   :  { %v121_v33 = vpop.xlane.xlu2 %120 }
 0x280   :  { %273 = vrcp.f32 %v121_v33 }
 0x286   :  { %v274_v34 = vpop.eup %273 }
 0x287   :  { %v123_v35 = vmul.f32 %v274_v34, %v272_v31 }
 0x289   :  { %220 = vst.msk [vmem:[#allocation4] sm:$0x3] %vm112_vm7, %v123_v35  ;;  %v131_v36 = vperm.slane %v123_v35, 1  ;;  %v124_v37 = vperm.slane %v123_v35, 0 }
 0x28a   :  { %242 = dma.vmem_to_hbm [thread:$0]  %s238_s26, 32, %s240_s29, [#allocation5]  }
 0x28b   :  { %136 = vperm.xlu1 %267, %v131_v36   ;;  %129 = vperm.xlu0 %266, %v124_v37  }
 0x2fd   :  { %v137_v42 = vpop.permute.xlu1 %136  ;;  %v130_v43 = vpop.permute.xlu0 %129 }
 0x2fe   :  { %v139_v44 = vmul.f32 %v137_v42, %v87_v18  ;;  %v138_v45 = vmul.f32 %v130_v43, %v84_v15 }
 0x300   :  { %v147_v46 = vsel %vm96_vm4, %v139_v44, 0.0  ;;  %v140_v47 = vsel %vm96_vm4, %v138_v45, 0.0 }
 0x301   :  { %v148_v48 = vrot.slane %v147_v46, 4  ;;  %v141_v49 = vrot.slane %v140_v47, 4 }
 0x303   :  { %v149_v50 = vadd.f32 %v148_v48, %v147_v46  ;;  %v142_v51 = vadd.f32 %v141_v49, %v140_v47 }
 0x305   :  { %v150_v52 = vrot.slane %v149_v50, 2  ;;  %v143_v53 = vrot.slane %v142_v51, 2 }
 0x307   :  { %v151_v54 = vadd.f32 %v150_v52, %v149_v50  ;;  %v144_v55 = vadd.f32 %v143_v53, %v142_v51 }
 0x309   :  { %v152_v56 = vrot.slane %v151_v54, 1  ;;  %v145_v57 = vrot.slane %v144_v55, 1 }
 0x30b   :  { %v146_v58 = vadd.f32 %v145_v57, %v144_v55  ;;  %v153_v59 = vadd.f32 %v152_v56, %v151_v54 }
 0x30d   :  { %v164_v60 = vsel %vm108_vm5, %v153_v59, %v146_v58 }
 0x30e   :  { %258 = vmatmul.msk.f32.vlgmr.msra.gmra.mxu1 %vm96_vm4, %v164_v60 }
 0x38b   :  { %v184_v0 = vpop.f32.mrf.mxu1 }
 0x38c   :  { %v185_v1 = vadd.f32 %v269_v63, %v184_v0 }
 0x38e   :  { %v187_v2 = vmax.f32 %v185_v1, 0.0 }
 0x390   :  { %259 = vmatmul.msk.f32.vlgmr.msra.gmra.mxu2 %vm194_vm8, %v187_v2 }
 0x413   :  { %v215_v4 = vpop.f32.mrf.mxu2 }
 0x414   :  { %v216_v5 = vadd.f32 %v270_v3, %v215_v4 }
 0x416   :  { %219 = vst.msk [vmem:[#allocation2] sm:$0x3] %vm218_vm9, %v216_v5 }
 0x417   :  { %231 = dma.vmem_to_hbm [thread:$0]  %s227_s4, 32, %s229_s12, [#allocation3]  }
 0x418   :  { %323 = dma.done.wait [#allocation3], 32  }
 0x419   :  { %324 = vsyncadd [#allocation3], 4294967264 }
 0x41a   :  { %325 = dma.done.wait [#allocation5], 32  }
 0x41b   :  { %326 = vsyncadd [#allocation5], 4294967264 }
 0x41c   :  { %251 = vsyncpa [#allocation3], 1 }
 0x41d   :  { %252 = vsyncpa [#allocation5], 1 }

</bundles_post_ra>
